<compile_context>
chip_gen: v7x
topology: tpu7x:2x2x1
jax: 0.10.0
libtpu: 0.0.40
codegen_flags: <defaults>
</compile_context>

<pallas_src>
import jax
import jax.numpy as jnp
import numpy as np
from jax.experimental import pallas as pl
from jax.experimental.pallas import tpu as pltpu


def _round_up(x, m):
    return ((x + m - 1) // m) * m


def _largest_divisor_leq(n, cap):
    return max(d for d in range(1, min(n, cap) + 1) if n % d == 0)


# --------------------------------------------------------------------------- #
# Kernel 1: GRU recurrence, grid = (batch chunks [parallel], time chunks
# [arbitrary]); hidden state carried across time chunks in VMEM scratch.
# --------------------------------------------------------------------------- #
def _gru_recurrence_kernel(emb_ref, ctx_ref, h0_ref, w_x_ref, w_c_ref, w_h_ref,
                           b_gc_ref, b_hn_ref,
                           h_all_ref, h_final_ref,
                           gx_scr, gc_scr, h_scr, hc_scr):
    """emb_ref : (TC*BC, E)  bf16  chunk of embedded tokens, row = t_in*BC + b_in
       ctx_ref : (BC, Hp)    f32   encoder context (constant over time)
       h0_ref  : (BC, Hp)    f32   initial hidden state
       w_x_ref : (E, 3Hp)    bf16  fused input->hidden weights  (gate order r,z,n)
       w_c_ref : (Hp, 3Hp)   bf16  fused context->hidden weights
       w_h_ref : (Hp, 3Hp)   bf16  fused hidden->hidden weights
       b_gc_ref: (1, 3Hp)    f32   b_i (all gates) + b_h (r,z) folded together
       b_hn_ref: (1, Hp)     f32   hidden-side bias of the n gate (stays in-loop)
       h_all   : (TC*BC, Hp) bf16  hidden states of this chunk
       h_final : (BC, Hp)    f32   last hidden state (written at last time chunk)
       gx_scr  : (TC*BC,3Hp) f32   batched input projection for this chunk
       gc_scr  : (BC, 3Hp)   f32   loop-invariant context projection (+biases)
       h_scr   : (BC, Hp)    f32   hidden-state carry across time chunks
       hc_scr  : (TC*BC, Hp) f32   per-chunk hidden states (cast to bf16 at end)
    """
    MC, _ = emb_ref.shape
    BC, Hp = h0_ref.shape
    TC = MC // BC
    H3 = 3 * Hp
    t_chunk = pl.program_id(1)

    # Once per batch chunk: context projection with folded biases + h carry init.
    @pl.when(t_chunk == 0)
    def _():
        gc_scr[...] = (jnp.dot(ctx_ref[...].astype(jnp.bfloat16), w_c_ref[...],
                               preferred_element_type=jnp.float32)
                       + b_gc_ref[...])
        h_scr[...] = h0_ref[...]

    # Batched input projection for the whole chunk: ONE fused (E,3Hp) matmul,
    # hoisted off the serial recurrence.
    gx_scr[...] = jnp.dot(emb_ref[...], w_x_ref[...],
                          preferred_element_type=jnp.float32)

    gc = gc_scr[...]                                      # loop-invariant, in vregs
    b_hn = jnp.broadcast_to(b_hn_ref[...], (BC, Hp))      # broadcast hoisted

    def step(t, h):
        off = pl.multiple_of(t * BC, BC)                  # sublane-aligned offset
        gxc = gx_scr[pl.ds(off, BC), :] + gc              # (BC, 3Hp)
        gh = jnp.dot(h.astype(jnp.bfloat16), w_h_ref[...],
                     preferred_element_type=jnp.float32)  # ONE fused matmul / step
        r = jax.nn.sigmoid(gxc[:, 0:Hp] + gh[:, 0:Hp])
        z = jax.nn.sigmoid(gxc[:, Hp:2 * Hp] + gh[:, Hp:2 * Hp])
        n = jnp.tanh(gxc[:, 2 * Hp:H3] + r * (gh[:, 2 * Hp:H3] + b_hn))
        h_new = (1.0 - z) * n + z * h                     # f32 carry
        hc_scr[pl.ds(off, BC), :] = h_new
        return h_new

    h_last = jax.lax.fori_loop(0, TC, step, h_scr[...])
    h_scr[...] = h_last                                   # carry to next chunk
    h_all_ref[...] = hc_scr[...].astype(h_all_ref.dtype)  # bf16 HBM writeback

    @pl.when(t_chunk == pl.num_programs(1) - 1)
    def _():
        h_final_ref[...] = h_last


def gru_recurrence(emb, ctx, h0, w_x, w_c, w_h, b_gc, b_hn, *, BC, TC):
    nb, nt, MC, E = emb.shape
    B_pad, Hp = h0.shape
    H3 = w_x.shape[1]

    # Explicit scoped-VMEM budget (double-buffered streamed blocks + weights +
    # scratch), so we never rely on generation-specific defaults.
    est = (2 * (MC * E * 2 + MC * Hp * 2)                       # emb in, h_all out
           + 3 * BC * Hp * 4                                    # ctx, h0, h_final
           + E * H3 * 2 + 2 * Hp * H3 * 2 + H3 * 4 + Hp * 4     # weights + biases
           + MC * H3 * 4 + BC * H3 * 4 + BC * Hp * 4 + MC * Hp * 4)   # scratch
    vmem_limit = max(2 * est + (4 << 20), 32 << 20)

    def full_spec(arr):
        return pl.BlockSpec(arr.shape, lambda b, t, _nd=arr.ndim: (0,) * _nd)

    return pl.pallas_call(
        _gru_recurrence_kernel,
        out_shape=(jax.ShapeDtypeStruct((nb, nt, MC, Hp), jnp.bfloat16),  # h_all
                   jax.ShapeDtypeStruct((B_pad, Hp), jnp.float32)),       # h_final
        grid_spec=pltpu.PrefetchScalarGridSpec(
            num_scalar_prefetch=0,
            grid=(nb, nt),
            in_specs=[
                pl.BlockSpec((None, None, MC, E), lambda b, t: (b, t, 0, 0)),
                pl.BlockSpec((BC, Hp), lambda b, t: (b, 0)),   # ctx
                pl.BlockSpec((BC, Hp), lambda b, t: (b, 0)),   # h0
                full_spec(w_x), full_spec(w_c), full_spec(w_h),
                full_spec(b_gc), full_spec(b_hn),
            ],
            out_specs=(
                pl.BlockSpec((None, None, MC, Hp), lambda b, t: (b, t, 0, 0)),
                pl.BlockSpec((BC, Hp), lambda b, t: (b, 0)),
            ),
            scratch_shapes=[pltpu.VMEM((MC, H3), jnp.float32),   # gx
                            pltpu.VMEM((BC, H3), jnp.float32),   # gc
                            pltpu.VMEM((BC, Hp), jnp.float32),   # h carry
                            pltpu.VMEM((MC, Hp), jnp.float32)],  # chunk h buffer
        ),
        compiler_params=pltpu.CompilerParams(
            dimension_semantics=("parallel", "arbitrary"),
            vmem_limit_bytes=int(vmem_limit)),
    )(emb, ctx, h0, w_x, w_c, w_h, b_gc, b_hn)


# --------------------------------------------------------------------------- #
# Kernel 2: output projection. h_all (bf16) fully resident; only the vocab
# axis streams, so w_out is read from HBM exactly once.
# --------------------------------------------------------------------------- #
def _dense_kernel(h_ref, w_ref, b_ref, out_ref):
    out_ref[...] = (jnp.dot(h_ref[...], w_ref[...],
                            preferred_element_type=jnp.float32)
                    + b_ref[...]).astype(out_ref.dtype)


def dense_projection(h_all, w_out, b_out):
    M, Hp = h_all.shape
    V_pad = w_out.shape[1]
    budget = 12 * 1024 * 1024            # fits v5e's 16 MiB default scoped VMEM
    h_bytes = M * Hp * 2                 # bf16, resident
    tn = 128                             # V_pad is a multiple of 128
    for cand in (V_pad, 4096, 2048, 1024, 512, 256):
        if cand <= V_pad and V_pad % cand == 0:
            per = 2 * h_bytes + 2 * (Hp * cand * 2 + cand * 4 + M * cand * 4)
            if per <= budget:
                tn = cand
                break
    est = 2 * h_bytes + 2 * (Hp * tn * 2 + tn * 4 + M * tn * 4)
    cost = pl.CostEstimate(
        flops=2 * M * Hp * V_pad,
        transcendentals=0,
        bytes_accessed=h_bytes + Hp * V_pad * 2 + V_pad * 4 + M * V_pad * 4)
    # TODO(synk): emit bf16 logits for generation workloads on v5e/v6e (halves
    # the dominant M x V writeback) if the downstream loss/sampler tolerates it.
    return pl.pallas_call(
        _dense_kernel,
        out_shape=jax.ShapeDtypeStruct((M, V_pad), jnp.float32),
        grid_spec=pltpu.PrefetchScalarGridSpec(
            num_scalar_prefetch=0,
            grid=(V_pad // tn,),
            in_specs=[pl.BlockSpec((M, Hp), lambda j: (0, 0)),
                      pl.BlockSpec((Hp, tn), lambda j: (0, j)),
                      pl.BlockSpec((1, tn), lambda j: (0, j))],
            out_specs=pl.BlockSpec((M, tn), lambda j: (0, j)),
        ),
        compiler_params=pltpu.CompilerParams(
            dimension_semantics=("parallel",),
            vmem_limit_bytes=int(max(2 * est + (4 << 20), 32 << 20))),
        cost_estimate=cost,
    )(h_all, w_out, b_out)


# --------------------------------------------------------------------------- #
# Concrete decoder: Embedding -> GRU(1 layer, with context) -> Dense.
# --------------------------------------------------------------------------- #
class PallasSeq2SeqDecoder:

    def __init__(self, vocab_size, embed_size, num_hiddens, key):
        ks = jax.random.split(key, 8)
        E, H = embed_size, num_hiddens
        Hp = _round_up(H, 128)                 # 128-aligned gate slices / lanes
        Vp = _round_up(vocab_size, 128)        # lane-dense logits
        self.vocab_size, self.embed_size, self.num_hiddens = vocab_size, E, H
        self.h_pad, self.vocab_pad = Hp, Vp

        scale_e = 1.0 / np.sqrt(E)
        scale_h = 1.0 / np.sqrt(H)
        self.embedding = (jax.random.normal(ks[0], (vocab_size, E), jnp.float32)
                          * scale_e).astype(jnp.bfloat16)

        def u(k, shape):
            return jax.random.uniform(k, shape, jnp.float32, -scale_h, scale_h)

        # Canonical per-gate params, gate order (r, z, n) — used by the reference.
        self.w_x_g = u(ks[1], (3, E, H)).astype(jnp.bfloat16)
        self.w_c_g = u(ks[2], (3, H, H)).astype(jnp.bfloat16)
        self.w_h_g = u(ks[3], (3, H, H)).astype(jnp.bfloat16)
        self.b_i_g = u(ks[4], (3, 1, H))
        self.b_h_g = u(ks[5], (3, 1, H))
        self.w_out_g = u(ks[6], (H, vocab_size)).astype(jnp.bfloat16)
        self.b_out_g = u(ks[7], (1, vocab_size))

        # Fused, zero-padded kernel params: gates packed along the last axis at
        # 128-aligned offsets (r at 0, z at Hp, n at 2*Hp). Zero padding keeps
        # the padded hidden columns exactly 0 through the recurrence.
        w_x_f = jnp.zeros((E, 3 * Hp), jnp.bfloat16)
        w_c_f = jnp.zeros((Hp, 3 * Hp), jnp.bfloat16)
        w_h_f = jnp.zeros((Hp, 3 * Hp), jnp.bfloat16)
        b_gc = jnp.zeros((1, 3 * Hp), jnp.float32)
        for g in range(3):
            w_x_f = w_x_f.at[:, g * Hp:g * Hp + H].set(self.w_x_g[g])
            w_c_f = w_c_f.at[:H, g * Hp:g * Hp + H].set(self.w_c_g[g])
            w_h_f = w_h_f.at[:H, g * Hp:g * Hp + H].set(self.w_h_g[g])
            fold = self.b_i_g[g] + (self.b_h_g[g] if g < 2 else 0.0)
            b_gc = b_gc.at[:, g * Hp:g * Hp + H].set(fold)
        self.w_x_f, self.w_c_f, self.w_h_f, self.b_gc = w_x_f, w_c_f, w_h_f, b_gc
        self.b_hn = jnp.zeros((1, Hp), jnp.float32).at[:, :H].set(self.b_h_g[2])
        self.w_out_f = jnp.zeros((Hp, Vp), jnp.bfloat16).at[:H, :vocab_size].set(
            self.w_out_g)
        self.b_out_f = jnp.zeros((1, Vp), jnp.float32).at[:, :vocab_size].set(
            self.b_out_g)

    def init_state(self, enc_outputs, *args):
        # enc_outputs ~ (outputs, hidden); keep the final encoder hidden state.
        return enc_outputs[1]

    def forward(self, X, state):
        """X: (batch, seq) int32 ids.  state: (batch, hidden) f32.
        Returns (logits (batch, seq, vocab), new_state (batch, hidden))."""
        B, T = X.shape
        E, H, Hp = self.embed_size, self.num_hiddens, self.h_pad
        V, Vp = self.vocab_size, self.vocab_pad

        B_pad = _round_up(B, 8)                      # sublane-full batch
        nb = 2 if B_pad % 16 == 0 else 1             # v7x: 2 TCs on the recurrence
        BC = B_pad // nb
        TC = _largest_divisor_leq(T, 32)             # time chunk (VMEM-bounded)
        nt = T // TC

        # Plain-JAX glue: embedding gather, time-major layout, chunking, padding.
        emb = jnp.take(self.embedding, X, axis=0)            # (B, T, E) bf16
        emb = jnp.transpose(emb, (1, 0, 2))                  # (T, B, E)
        emb = jnp.zeros((T, B_pad, E), self.embedding.dtype).at[:, :B, :].set(emb)
        emb = (emb.reshape(nt, TC, nb, BC, E)
                  .transpose(2, 0, 1, 3, 4)
                  .reshape(nb, nt, TC * BC, E))              # row = t_in*BC + b_in

        state_p = jnp.zeros((B_pad, Hp), jnp.float32).at[:B, :H].set(
            state.astype(jnp.float32))

        # Phase 1: serial GRU recurrence (context == initial decoder state).
        h_all, h_final = gru_recurrence(emb, state_p, state_p,
                                        self.w_x_f, self.w_c_f, self.w_h_f,
                                        self.b_gc, self.b_hn, BC=BC, TC=TC)

        # Phase 2: vocab projection over all rows; w_out streamed exactly once.
        M = T * B_pad
        logits_p = dense_projection(h_all.reshape(M, Hp),
                                    self.w_out_f, self.b_out_f)     # (M, Vp)

        logits = (logits_p.reshape(nb, nt, TC, BC, Vp)
                          .transpose(1, 2, 0, 3, 4)
                          .reshape(T, B_pad, Vp)[:, :B, :V])
        logits = jnp.transpose(logits, (1, 0, 2))                   # (B, T, V)
        return logits, h_final[:B, :H]


# --------------------------------------------------------------------------- #
# Pure-JAX reference (same bf16-operand / f32-accumulate recipe).
# --------------------------------------------------------------------------- #
def _reference_forward(dec, X, state):
    emb = jnp.take(dec.embedding, X, axis=0)        # (B, T, E) bf16
    emb = jnp.transpose(emb, (1, 0, 2))             # (T, B, E)
    ctx = state.astype(jnp.bfloat16)

    gc = [jnp.dot(ctx, dec.w_c_g[g], preferred_element_type=jnp.float32)
          + dec.b_i_g[g] for g in range(3)]

    def step(h, x_t):
        gx = [jnp.dot(x_t, dec.w_x_g[g], preferred_element_type=jnp.float32) + gc[g]
              for g in range(3)]
        h_bf = h.astype(jnp.bfloat16)
        gh = [jnp.dot(h_bf, dec.w_h_g[g], preferred_element_type=jnp.float32)
              + dec.b_h_g[g] for g in range(3)]
        r = jax.nn.sigmoid(gx[0] + gh[0])
        z = jax.nn.sigmoid(gx[1] + gh[1])
        n = jnp.tanh(gx[2] + r * gh[2])
        h_new = (1.0 - z) * n + z * h
        logits = jnp.dot(h_new.astype(jnp.bfloat16), dec.w_out_g,
                         preferred_element_type=jnp.float32) + dec.b_out_g
        return h_new, logits

    h_final, logits_tm = jax.lax.scan(step, state.astype(jnp.float32), emb)
    return jnp.transpose(logits_tm, (1, 0, 2)), h_final


if __name__ == "__main__":
    key = jax.random.PRNGKey(0)
    k_param, k_tok, k_state = jax.random.split(key, 3)

    batch, seq, vocab, embed, hidden = 2, 8, 24, 16, 32
    dec = PallasSeq2SeqDecoder(vocab, embed, hidden, k_param)

    X = jax.random.randint(k_tok, (batch, seq), 0, vocab, dtype=jnp.int32)
    enc_hidden = jax.random.normal(k_state, (batch, hidden), jnp.float32)
    state = dec.init_state((None, enc_hidden))

    logits, new_state = dec.forward(X, state)
    jax.block_until_ready((logits, new_state))

    ref_logits, ref_state = _reference_forward(dec, X, state)
    # Matmul operands are bf16 (f32 accumulate) in both paths; tolerance sized
    # for bf16 rounding / reduction-order differences across the recurrence.
    np.testing.assert_allclose(np.asarray(logits), np.asarray(ref_logits),
                               atol=2e-2, rtol=2e-2)
    np.testing.assert_allclose(np.asarray(new_state), np.asarray(ref_state),
                               atol=2e-2, rtol=2e-2)

    assert logits.shape == (batch, seq, vocab)
    assert new_state.shape == (batch, hidden)
    print("KERNEL_OK")
</pallas_src>

<mosaic_0001>
module attributes {stable_mosaic.version = 11 : i64} {
  func.func @_gru_recurrence_kernel(%arg0: i32, %arg1: i32, %arg2: memref<1x1x64x16xbf16, #tpu.memory_space<vmem>>, %arg3: memref<8x128xf32, #tpu.memory_space<vmem>>, %arg4: memref<8x128xf32, #tpu.memory_space<vmem>>, %arg5: memref<16x384xbf16, #tpu.memory_space<vmem>>, %arg6: memref<128x384xbf16, #tpu.memory_space<vmem>>, %arg7: memref<128x384xbf16, #tpu.memory_space<vmem>>, %arg8: memref<1x384xf32, #tpu.memory_space<vmem>>, %arg9: memref<1x128xf32, #tpu.memory_space<vmem>>, %arg10: memref<1x1x64x128xbf16, #tpu.memory_space<vmem>>, %arg11: memref<8x128xf32, #tpu.memory_space<vmem>>, %arg12: memref<64x384xf32, #tpu.memory_space<vmem>>, %arg13: memref<8x384xf32, #tpu.memory_space<vmem>>, %arg14: memref<8x128xf32, #tpu.memory_space<vmem>>, %arg15: memref<64x128xf32, #tpu.memory_space<vmem>>) attributes {dimension_semantics = [#tpu.dimension_semantics<parallel>, #tpu.dimension_semantics<arbitrary>], iteration_bounds = array<i64: 1, 1>, scalar_prefetch = 0 : i64, scratch_operands = 4 : i64, tpu.core_type = #tpu.core_type<tc>, window_params = [{transform_indices = @transform_0, window_bounds = array<i64: 1, 1, 64, 16>}, {transform_indices = @transform_1, window_bounds = array<i64: 8, 128>}, {transform_indices = @transform_2, window_bounds = array<i64: 8, 128>}, {pipeline_mode = #tpu.pipeline_mode<synchronous>, transform_indices = @transform_3, window_bounds = array<i64: 16, 384>}, {pipeline_mode = #tpu.pipeline_mode<synchronous>, transform_indices = @transform_4, window_bounds = array<i64: 128, 384>}, {pipeline_mode = #tpu.pipeline_mode<synchronous>, transform_indices = @transform_5, window_bounds = array<i64: 128, 384>}, {pipeline_mode = #tpu.pipeline_mode<synchronous>, transform_indices = @transform_6, window_bounds = array<i64: 1, 384>}, {pipeline_mode = #tpu.pipeline_mode<synchronous>, transform_indices = @transform_7, window_bounds = array<i64: 1, 128>}, {transform_indices = @transform_8, window_bounds = array<i64: 1, 1, 64, 128>}, {transform_indices = @transform_9, window_bounds = array<i64: 8, 128>}]} {
    %c0_i32 = arith.constant 0 : i32
    %0 = arith.cmpi eq, %arg1, %c0_i32 : i32
    %1 = arith.extui %0 : i1 to i32
    %c0_i32_0 = arith.constant 0 : i32
    %2 = arith.cmpi ne, %1, %c0_i32_0 : i32
    scf.if %2 {
      %c0_26 = arith.constant 0 : index
      %c0_27 = arith.constant 0 : index
      %24 = vector.load %arg3[%c0_26, %c0_27] : memref<8x128xf32, #tpu.memory_space<vmem>>, vector<8x128xf32>
      %25 = arith.truncf %24 : vector<8x128xf32> to vector<8x128xbf16>
      %c0_28 = arith.constant 0 : index
      %c0_29 = arith.constant 0 : index
      %26 = vector.load %arg6[%c0_28, %c0_29] : memref<128x384xbf16, #tpu.memory_space<vmem>>, vector<128x384xbf16>
      %cst_30 = arith.constant dense<0.000000e+00> : vector<8x384xf32>
      %27 = tpu.matmul %25, %26, %cst_30 {dimension_numbers = #tpu.dot_dimension_numbers<[1], [0], [0], [1], [0, 0, 1, 1], [], []>} : vector<8x128xbf16>, vector<128x384xbf16>, vector<8x384xf32> -> vector<8x384xf32>
      %c0_31 = arith.constant 0 : index
      %c0_32 = arith.constant 0 : index
      %28 = vector.load %arg8[%c0_31, %c0_32] : memref<1x384xf32, #tpu.memory_space<vmem>>, vector<1x384xf32>
      %29 = vector.broadcast %28 : vector<1x384xf32> to vector<8x384xf32>
      %30 = arith.addf %27, %29 : vector<8x384xf32>
      %c0_33 = arith.constant 0 : index
      %c0_34 = arith.constant 0 : index
      %31 = vector.load %arg13[%c0_33, %c0_34] : memref<8x384xf32, #tpu.memory_space<vmem>>, vector<8x384xf32>
      tpu.vector_store %arg13[%c0_33, %c0_34], %30 {strides = array<i32>} : memref<8x384xf32, #tpu.memory_space<vmem>>, vector<8x384xf32>,
      %c0_35 = arith.constant 0 : index
      %c0_36 = arith.constant 0 : index
      %32 = vector.load %arg4[%c0_35, %c0_36] : memref<8x128xf32, #tpu.memory_space<vmem>>, vector<8x128xf32>
      %c0_37 = arith.constant 0 : index
      %c0_38 = arith.constant 0 : index
      %33 = vector.load %arg14[%c0_37, %c0_38] : memref<8x128xf32, #tpu.memory_space<vmem>>, vector<8x128xf32>
      tpu.vector_store %arg14[%c0_37, %c0_38], %32 {strides = array<i32>} : memref<8x128xf32, #tpu.memory_space<vmem>>, vector<8x128xf32>,
    } else {
    }
    %c0 = arith.constant 0 : index
    %c0_1 = arith.constant 0 : index
    %c0_2 = arith.constant 0 : index
    %c0_3 = arith.constant 0 : index
    %3 = vector.load %arg2[%c0, %c0_1, %c0_2, %c0_3] : memref<1x1x64x16xbf16, #tpu.memory_space<vmem>>, vector<1x1x64x16xbf16>
    %4 = vector.shape_cast %3 : vector<1x1x64x16xbf16> to vector<64x16xbf16>
    %c0_4 = arith.constant 0 : index
    %c0_5 = arith.constant 0 : index
    %5 = vector.load %arg5[%c0_4, %c0_5] : memref<16x384xbf16, #tpu.memory_space<vmem>>, vector<16x384xbf16>
    %cst = arith.constant dense<0.000000e+00> : vector<64x384xf32>
    %6 = tpu.matmul %4, %5, %cst {dimension_numbers = #tpu.dot_dimension_numbers<[1], [0], [0], [1], [0, 0, 1, 1], [], []>} : vector<64x16xbf16>, vector<16x384xbf16>, vector<64x384xf32> -> vector<64x384xf32>
    %c0_6 = arith.constant 0 : index
    %c0_7 = arith.constant 0 : index
    %7 = vector.load %arg12[%c0_6, %c0_7] : memref<64x384xf32, #tpu.memory_space<vmem>>, vector<64x384xf32>
    tpu.vector_store %arg12[%c0_6, %c0_7], %6 {strides = array<i32>} : memref<64x384xf32, #tpu.memory_space<vmem>>, vector<64x384xf32>,
    %c0_8 = arith.constant 0 : index
    %c0_9 = arith.constant 0 : index
    %8 = vector.load %arg13[%c0_8, %c0_9] : memref<8x384xf32, #tpu.memory_space<vmem>>, vector<8x384xf32>
    %c0_10 = arith.constant 0 : index
    %c0_11 = arith.constant 0 : index
    %9 = vector.load %arg9[%c0_10, %c0_11] : memref<1x128xf32, #tpu.memory_space<vmem>>, vector<1x128xf32>
    %10 = vector.shape_cast %9 : vector<1x128xf32> to vector<1x128xf32>
    %11 = vector.broadcast %10 : vector<1x128xf32> to vector<8x128xf32>
    %c0_12 = arith.constant 0 : index
    %c0_13 = arith.constant 0 : index
    %12 = vector.load %arg14[%c0_12, %c0_13] : memref<8x128xf32, #tpu.memory_space<vmem>>, vector<8x128xf32>
    %c0_i32_14 = arith.constant 0 : i32
    %c8_i32 = arith.constant 8 : i32
    %13 = arith.addi %c0_i32_14, %c8_i32 : i32
    %c1_i32 = arith.constant 1 : i32
    %14 = scf.for %arg16 = %c0_i32_14 to %13 step %c1_i32 iter_args(%arg17 = %12) -> (vector<8x128xf32>)  : i32 {
      %c8_i32_26 = arith.constant 8 : i32
      %24 = arith.muli %arg16, %c8_i32_26 : i32
      %25 = tpu.assume_multiple %24, 8 : i32
      %26 = arith.index_cast %25 : i32 to index
      %c0_27 = arith.constant 0 : index
      %27 = vector.load %arg12[%26, %c0_27] : memref<64x384xf32, #tpu.memory_space<vmem>>, vector<8x384xf32>
      %28 = arith.addf %27, %8 : vector<8x384xf32>
      %29 = arith.truncf %arg17 : vector<8x128xf32> to vector<8x128xbf16>
      %c0_28 = arith.constant 0 : index
      %c0_29 = arith.constant 0 : index
      %30 = vector.load %arg7[%c0_28, %c0_29] : memref<128x384xbf16, #tpu.memory_space<vmem>>, vector<128x384xbf16>
      %cst_30 = arith.constant dense<0.000000e+00> : vector<8x384xf32>
      %31 = tpu.matmul %29, %30, %cst_30 {dimension_numbers = #tpu.dot_dimension_numbers<[1], [0], [0], [1], [0, 0, 1, 1], [], []>} : vector<8x128xbf16>, vector<128x384xbf16>, vector<8x384xf32> -> vector<8x384xf32>
      %32 = vector.extract_strided_slice %28 {offsets = [0, 0], sizes = [8, 128], strides = [1, 1]} : vector<8x384xf32> to vector<8x128xf32>
      %33 = vector.extract_strided_slice %31 {offsets = [0, 0], sizes = [8, 128], strides = [1, 1]} : vector<8x384xf32> to vector<8x128xf32>
      %34 = arith.addf %32, %33 : vector<8x128xf32>
      %35 = arith.negf %34 : vector<8x128xf32>
      %36 = math.exp %35 : vector<8x128xf32>
      %cst_31 = arith.constant 1.000000e+00 : f32
      %37 = vector.broadcast %cst_31 : f32 to vector<8x128xf32>
      %38 = arith.addf %37, %36 : vector<8x128xf32>
      %39 = arith.divf %37, %38 : vector<8x128xf32>
      %40 = vector.extract_strided_slice %28 {offsets = [0, 128], sizes = [8, 128], strides = [1, 1]} : vector<8x384xf32> to vector<8x128xf32>
      %41 = vector.extract_strided_slice %31 {offsets = [0, 128], sizes = [8, 128], strides = [1, 1]} : vector<8x384xf32> to vector<8x128xf32>
      %42 = arith.addf %40, %41 : vector<8x128xf32>
      %43 = arith.negf %42 : vector<8x128xf32>
      %44 = math.exp %43 : vector<8x128xf32>
      %cst_32 = arith.constant 1.000000e+00 : f32
      %45 = vector.broadcast %cst_32 : f32 to vector<8x128xf32>
      %46 = arith.addf %45, %44 : vector<8x128xf32>
      %47 = arith.divf %45, %46 : vector<8x128xf32>
      %48 = vector.extract_strided_slice %28 {offsets = [0, 256], sizes = [8, 128], strides = [1, 1]} : vector<8x384xf32> to vector<8x128xf32>
      %49 = vector.extract_strided_slice %31 {offsets = [0, 256], sizes = [8, 128], strides = [1, 1]} : vector<8x384xf32> to vector<8x128xf32>
      %50 = arith.addf %49, %11 : vector<8x128xf32>
      %51 = arith.mulf %39, %50 : vector<8x128xf32>
      %52 = arith.addf %48, %51 : vector<8x128xf32>
      %53 = math.tanh %52 : vector<8x128xf32>
      %cst_33 = arith.constant 1.000000e+00 : f32
      %54 = vector.broadcast %cst_33 : f32 to vector<8x128xf32>
      %55 = arith.subf %54, %47 : vector<8x128xf32>
      %56 = arith.mulf %55, %53 : vector<8x128xf32>
      %57 = arith.mulf %47, %arg17 : vector<8x128xf32>
      %58 = arith.addf %56, %57 : vector<8x128xf32>
      %59 = arith.index_cast %25 : i32 to index
      %c0_34 = arith.constant 0 : index
      %60 = vector.load %arg15[%59, %c0_34] : memref<64x128xf32, #tpu.memory_space<vmem>>, vector<8x128xf32>
      tpu.vector_store %arg15[%59, %c0_34], %58 {strides = array<i32>} : memref<64x128xf32, #tpu.memory_space<vmem>>, vector<8x128xf32>,
      scf.yield %58 : vector<8x128xf32>
    }
    %c8_i32_15 = arith.constant 8 : i32
    %c0_16 = arith.constant 0 : index
    %c0_17 = arith.constant 0 : index
    %15 = vector.load %arg14[%c0_16, %c0_17] : memref<8x128xf32, #tpu.memory_space<vmem>>, vector<8x128xf32>
    tpu.vector_store %arg14[%c0_16, %c0_17], %14 {strides = array<i32>} : memref<8x128xf32, #tpu.memory_space<vmem>>, vector<8x128xf32>,
    %c0_18 = arith.constant 0 : index
    %c0_19 = arith.constant 0 : index
    %16 = vector.load %arg15[%c0_18, %c0_19] : memref<64x128xf32, #tpu.memory_space<vmem>>, vector<64x128xf32>
    %17 = arith.truncf %16 : vector<64x128xf32> to vector<64x128xbf16>
    %c0_20 = arith.constant 0 : index
    %c0_21 = arith.constant 0 : index
    %c0_22 = arith.constant 0 : index
    %c0_23 = arith.constant 0 : index
    %18 = vector.load %arg10[%c0_20, %c0_21, %c0_22, %c0_23] : memref<1x1x64x128xbf16, #tpu.memory_space<vmem>>, vector<1x1x64x128xbf16>
    %19 = vector.shape_cast %18 : vector<1x1x64x128xbf16> to vector<64x128xbf16>
    %20 = vector.shape_cast %17 : vector<64x128xbf16> to vector<1x1x64x128xbf16>
    tpu.vector_store %arg10[%c0_20, %c0_21, %c0_22, %c0_23], %20 {strides = array<i32>} : memref<1x1x64x128xbf16, #tpu.memory_space<vmem>>, vector<1x1x64x128xbf16>,
    %c0_i32_24 = arith.constant 0 : i32
    %21 = arith.cmpi eq, %arg1, %c0_i32_24 : i32
    %22 = arith.extui %21 : i1 to i32
    %c0_i32_25 = arith.constant 0 : i32
    %23 = arith.cmpi ne, %22, %c0_i32_25 : i32
    scf.if %23 {
      %c0_26 = arith.constant 0 : index
      %c0_27 = arith.constant 0 : index
      %24 = vector.load %arg11[%c0_26, %c0_27] : memref<8x128xf32, #tpu.memory_space<vmem>>, vector<8x128xf32>
      tpu.vector_store %arg11[%c0_26, %c0_27], %14 {strides = array<i32>} : memref<8x128xf32, #tpu.memory_space<vmem>>, vector<8x128xf32>,
    } else {
    }
    return
  }
  func.func @transform_0(%arg0: i32, %arg1: i32) -> (i32, i32, i32, i32) {
    %c0_i32 = arith.constant 0 : i32
    %c0_i32_0 = arith.constant 0 : i32
    %c0_i32_1 = arith.constant 0 : i32
    return %arg0, %arg1, %c0_i32, %c0_i32_0 : i32, i32, i32, i32
  }
  func.func @transform_1(%arg0: i32, %arg1: i32) -> (i32, i32) {
    %c0_i32 = arith.constant 0 : i32
    %c0_i32_0 = arith.constant 0 : i32
    return %arg0, %c0_i32 : i32, i32
  }
  func.func @transform_2(%arg0: i32, %arg1: i32) -> (i32, i32) {
    %c0_i32 = arith.constant 0 : i32
    %c0_i32_0 = arith.constant 0 : i32
    return %arg0, %c0_i32 : i32, i32
  }
  func.func @transform_3(%arg0: i32, %arg1: i32) -> (i32, i32) {
    %c0_i32 = arith.constant 0 : i32
    %c0_i32_0 = arith.constant 0 : i32
    %c0_i32_1 = arith.constant 0 : i32
    return %c0_i32, %c0_i32_0 : i32, i32
  }
  func.func @transform_4(%arg0: i32, %arg1: i32) -> (i32, i32) {
    %c0_i32 = arith.constant 0 : i32
    %c0_i32_0 = arith.constant 0 : i32
    %c0_i32_1 = arith.constant 0 : i32
    return %c0_i32, %c0_i32_0 : i32, i32
  }
  func.func @transform_5(%arg0: i32, %arg1: i32) -> (i32, i32) {
    %c0_i32 = arith.constant 0 : i32
    %c0_i32_0 = arith.constant 0 : i32
    %c0_i32_1 = arith.constant 0 : i32
    return %c0_i32, %c0_i32_0 : i32, i32
  }
  func.func @transform_6(%arg0: i32, %arg1: i32) -> (i32, i32) {
    %c0_i32 = arith.constant 0 : i32
    %c0_i32_0 = arith.constant 0 : i32
    %c0_i32_1 = arith.constant 0 : i32
    return %c0_i32, %c0_i32_0 : i32, i32
  }
  func.func @transform_7(%arg0: i32, %arg1: i32) -> (i32, i32) {
    %c0_i32 = arith.constant 0 : i32
    %c0_i32_0 = arith.constant 0 : i32
    %c0_i32_1 = arith.constant 0 : i32
    return %c0_i32, %c0_i32_0 : i32, i32
  }
  func.func @transform_8(%arg0: i32, %arg1: i32) -> (i32, i32, i32, i32) {
    %c0_i32 = arith.constant 0 : i32
    %c0_i32_0 = arith.constant 0 : i32
    %c0_i32_1 = arith.constant 0 : i32
    return %arg0, %arg1, %c0_i32, %c0_i32_0 : i32, i32, i32, i32
  }
  func.func @transform_9(%arg0: i32, %arg1: i32) -> (i32, i32) {
    %c0_i32 = arith.constant 0 : i32
    %c0_i32_0 = arith.constant 0 : i32
    return %arg0, %c0_i32 : i32, i32
  }
}

</mosaic_0001>

<bundles_post_ra>
// kernel: tpu_custom_call.1
= control target key start
LH: loop header
LB: loop body
LE: loop exit
PB: predicated region body
PF: predicated region fallthrough
CT: control target
= control target key end

     0   :  { %15 = vsyncpa [#allocation7], 0  ;;  %s1549_s0 = inlined_call_operand.vmem [shape: bf16[1,1,64,16], index: 0, kind: input, shape index: {}]   ;;  %s1550_s1 = inlined_call_operand.vmem [shape: f32[8,128], index: 1, kind: input, shape index: {}]   ;;  %s1551_s2 = inlined_call_operand.vmem [shape: f32[8,128], index: 2, kind: input, shape index: {}]   ;;  %s1552_s3 = inlined_call_operand.vmem [shape: bf16[16,384], index: 3, kind: input, shape index: {}]   ;;  %s1553_s4 = inlined_call_operand.hbm [shape: bf16[128,384], index: 4, kind: input, shape index: {}]   ;;  %s1554_s5 = inlined_call_operand.hbm [shape: bf16[128,384], index: 5, kind: input, shape index: {}]   ;;  %s1555_s6 = inlined_call_operand.vmem [shape: f32[1,384], index: 6, kind: input, shape index: {}]   ;;  %s1556_s7 = inlined_call_operand.vmem [shape: f32[1,128], index: 7, kind: input, shape index: {}]   ;;  %s1557_s8 = inlined_call_operand.hbm [shape: bf16[1,1,64,128], index: 8, kind: output, shape index: {0}]   ;;  %s1558_s9 = inlined_call_operand.hbm [shape: f32[8,128], index: 9, kind: output, shape index: {1}]  }
   0x1   :  { %16 = vsyncpa [#allocation10], 0 }
   0x2   :  { %17 = vsyncpa [#allocation8], 0 }
   0x3   :  { %18 = vsyncpa [#allocation13], 0  ;;  %s1354_s30 = smov [#allocation6]   ;;  %s1242_s13 = scalar_lea.hbm %s1553_s4, 3072 }
   0x4   :  { %s32_s10 = sshll.u32 %s1354_s30, 4  ;;  %p1243_p0 = scmp.ne.s32.totalorder %s1553_s4, %s1242_s13  ;;  %s33_s10 = int_to_ptr.vmem [resolvable:$true] %s32_s10 }
   0x5   :  { %p1246_p1 = scmp.lt.u32.totalorder %s1242_s13, %s1553_s4 }
   0x7   :  { %p1248_p2 = pnand %p1246_p1, %p1243_p0 }
   0x9   :  { %1251 = shalt.err (!%p1248_p2)
}
   0xa   :  { %s1252_s18 = scalar_lea.vmem %s33_s10, 3072  ;;  %p1257_p4 = scmp.lt.s32.totalorder %s33_s10, %s33_s10 }
   0xb   :  { %p1253_p3 = scmp.ne.s32.totalorder %s33_s10, %s1252_s18  ;;  %p1258_p5 = scmp.lt.s32.totalorder %s1252_s18, %s1252_s18 }
   0xd   :  { %p1259_p6 = por %p1258_p5, %p1257_p4 }
   0xf   :  { %p1260_p7 = pnand %p1259_p6, %p1253_p3 }
  0x11   :  { %1263 = shalt.err (!%p1260_p7)
}
  0x12   :  { %s1355_s19 = smov 192   ;;  %s1356_s20 = smov 12  }
  0x13   :  { %38 = dma.hbm_to_vmem [thread:$0]  %s1553_s4, 3072, %s33_s10, [#allocation7], %s1355_s19, %s1355_s19, %s1356_s20  }
  0x14   :  { %s1357_s23 = smov [#allocation9]   ;;  %s1264_s27 = scalar_lea.hbm %s1554_s5, 3072 }
  0x15   :  { %s44_s24 = sshll.u32 %s1357_s23, 4  ;;  %p1265_p8 = scmp.ne.s32.totalorder %s1554_s5, %s1264_s27  ;;  %s45_s24 = int_to_ptr.vmem [resolvable:$true] %s44_s24 }
  0x16   :  { %p1268_p9 = scmp.lt.u32.totalorder %s1264_s27, %s1554_s5 }
  0x18   :  { %p1270_p10 = pnand %p1268_p9, %p1265_p8 }
  0x1a   :  { %1273 = shalt.err (!%p1270_p10)
}
  0x1b   :  { %s1274_s12 = scalar_lea.vmem %s45_s24, 3072  ;;  %p1279_p12 = scmp.lt.s32.totalorder %s45_s24, %s45_s24 }
  0x1c   :  { %p1275_p11 = scmp.ne.s32.totalorder %s45_s24, %s1274_s12  ;;  %p1280_p13 = scmp.lt.s32.totalorder %s1274_s12, %s1274_s12 }
  0x1e   :  { %p1281_p0 = por %p1280_p13, %p1279_p12 }
  0x20   :  { %p1282_p1 = pnand %p1281_p0, %p1275_p11 }
  0x22   :  { %1285 = shalt.err (!%p1282_p1)
}
  0x23   :  { %50 = dma.hbm_to_vmem [thread:$0]  %s1554_s5, 3072, %s45_s24, [#allocation10], %s1355_s19, %s1355_s19, %s1356_s20  }
  0x24   :  { %1338 = dma.done.wait [#allocation7], 3072  }
  0x25   :  { %1339 = vsyncadd [#allocation7], 4294964224 }
  0x26   :  { %1340 = dma.done.wait [#allocation10], 3072  }
  0x27   :  { %1341 = vsyncadd [#allocation10], 4294964224  ;;  %v1358_v0 = vmov 0.0   ;;  %vm1359_vm0 = vmmov 0   ;;  %v1360_v1 = vmov 0   ;;  %v1446_v2 = vld [vmem:[%s1551_s2] sm:$0xff]   ;;  %v102_v37 = vlaneseq }
  0x28   :  { %1078 = vmatprep.subr.bf16.mxu1 %v1358_v0  ;;  %1094 = vmatprep.mubr.msk.bf16.mxu1 %vm1359_vm0, %v1358_v0  ;;  %v1451_v3 = vld [vmem:[%s1556_s7] ss:$0 sm:$0xff]  ;;  %v1160_v4 = vld [vmem:[#allocation6 + $0x4] ss:$12 sps:$4 sm:$0xff]   ;;  %v1163_v6 = vld [vmem:[#allocation6] ss:$12 sps:$4 sm:$0xff]  }
  0x29   :  { %277 = vmatprep.mubr.bf16.mxu0 %v1360_v1  ;;  %v1162_v5 = vld [vmem:[#allocation6 + $0x8] ss:$12 sps:$4 sm:$0xff]   ;;  %245 = vmatprep.subr.bf16.mxu0 %v1160_v4  ;;  %v1166_v8 = vld [vmem:[#allocation6 + $0x20] ss:$12 sps:$4 sm:$0xff]   ;;  %v1167_v9 = vld [vmem:[#allocation6 + $0x18] ss:$12 sps:$4 sm:$0xff]  }
  0x2a   :  { %v1164_v7 = vld [vmem:[#allocation6 + $0x1c] ss:$12 sps:$4 sm:$0xff]   ;;  %1079 = vmatpush3.bf16.msra.mxu1 %v1162_v5  ;;  %246 = vmatpush1.bf16.msra.mxu0 %v1163_v6  ;;  %v1168_v10 = vld [vmem:[#allocation6 + $0x34] ss:$12 sps:$4 sm:$0xff]   ;;  %v1170_v11 = vld [vmem:[#allocation6 + $0x38] ss:$12 sps:$4 sm:$0xff]  }
  0x2b   :  { %1080 = vmatprep.subr.bf16.mxu1 %v1358_v0  ;;  %247 = vmatprep.subr.bf16.mxu0 %v1164_v7  ;;  %v1171_v12 = vld [vmem:[#allocation6 + $0x30] ss:$12 sps:$4 sm:$0xff]   ;;  %v1172_v13 = vld [vmem:[#allocation6 + $0x4c] ss:$12 sps:$4 sm:$0xff]   ;;  %v1175_v15 = vld [vmem:[#allocation6 + $0x48] ss:$12 sps:$4 sm:$0xff]  }
  0x2c   :  { %v1174_v14 = vld [vmem:[#allocation6 + $0x50] ss:$12 sps:$4 sm:$0xff]   ;;  %v1178_v17 = vld [vmem:[#allocation6 + $0x68] ss:$12 sps:$4 sm:$0xff]   ;;  %v1179_v18 = vld [vmem:[#allocation6 + $0x60] ss:$12 sps:$4 sm:$0xff]  }
  0x2d   :  { %v1176_v16 = vld [vmem:[#allocation6 + $0x64] ss:$12 sps:$4 sm:$0xff]   ;;  %v1180_v19 = vld [vmem:[#allocation6 + $0x7c] ss:$12 sps:$4 sm:$0xff]   ;;  %v1182_v20 = vld [vmem:[#allocation6 + $0x80] ss:$12 sps:$4 sm:$0xff]  }
  0x2e   :  { %1081 = vmatpush3.bf16.msra.mxu1 %v1166_v8  ;;  %248 = vmatpush1.bf16.msra.mxu0 %v1167_v9  ;;  %v1183_v21 = vld [vmem:[#allocation6 + $0x78] ss:$12 sps:$4 sm:$0xff]   ;;  %v1184_v22 = vld [vmem:[#allocation6 + $0x94] ss:$12 sps:$4 sm:$0xff]   ;;  %v1187_v24 = vld [vmem:[#allocation6 + $0x90] ss:$12 sps:$4 sm:$0xff]  }
  0x2f   :  { %1082 = vmatprep.subr.bf16.mxu1 %v1358_v0  ;;  %249 = vmatprep.subr.bf16.mxu0 %v1168_v10  ;;  %v1186_v23 = vld [vmem:[#allocation6 + $0x98] ss:$12 sps:$4 sm:$0xff]   ;;  %v1190_v26 = vld [vmem:[#allocation6 + $0xb0] ss:$12 sps:$4 sm:$0xff]   ;;  %v1191_v27 = vld [vmem:[#allocation6 + $0xa8] ss:$12 sps:$4 sm:$0xff]  }
  0x30   :  { %v1188_v25 = vld [vmem:[#allocation6 + $0xac] ss:$12 sps:$4 sm:$0xff]   ;;  %v1192_v31 = vld [vmem:[%s1552_s3] ss:$12 sps:$4 sm:$0xff]   ;;  %v1197_v32 = vld [vmem:[%s1552_s3 + $0x8] ss:$12 sps:$4 sm:$0xff]  }
  0x31   :  { %v66_v28 = vld [vmem:[%s1550_s1] sm:$0xff]  ;;  %v1195_v33 = vld [vmem:[%s1549_s0 + $0x18] sm:$0xff]   ;;  %vm379_vm1 = vcmask 130048   ;;  %v1198_v35 = vld [vmem:[%s1549_s0 + $0x8] sm:$0xff]   ;;  %v103_v38 = vshrl.u32 %v102_v37, 7 }
  0x32   :  { %1083 = vmatpush3.bf16.msra.mxu1 %v1170_v11  ;;  %250 = vmatpush1.bf16.msra.mxu0 %v1171_v12  ;;  %v1194_v29 = vld [vmem:[%s1552_s3 + $0x4] ss:$12 sps:$4 sm:$0xff]   ;;  %v67_v30 = vpack.c.bf16 %v66_v28, %v66_v28  ;;  %v100_v41 = vld [vmem:[%s1555_s6] sm:$0x7] }
  0x33   :  { %1084 = vmatprep.subr.bf16.mxu1 %v1358_v0  ;;  %251 = vmatprep.subr.bf16.mxu0 %v1172_v13  ;;  %v1196_v34 = vld [vmem:[%s1549_s0] sm:$0xff]   ;;  %v1199_v36 = vld [vmem:[%s1549_s0 + $0x10] sm:$0xff]   ;;  %v112_v39 = vsub.s32 2, %v103_v38  ;;  %v104_v40 = vsub.s32 0, %v103_v38  ;;  %v108_v42 = vsub.s32 1, %v103_v38  ;;  %s1493_s0 = smov 0  }
  0x35   :  { %v113_v43 = vrot.slane %v100_v41, %v112_v39  ;;  %v105_v44 = vrot.slane %v100_v41, %v104_v40  ;;  %v109_v45 = vrot.slane %v100_v41, %v108_v42 }
  0x36   :  { %1085 = vmatpush3.bf16.msra.mxu1 %v1174_v14  ;;  %252 = vmatpush1.bf16.msra.mxu0 %v1175_v15 }
  0x37   :  { %1086 = vmatprep.subr.bf16.mxu1 %v1358_v0  ;;  %253 = vmatprep.subr.bf16.mxu0 %v1176_v16 }
  0x3a   :  { %1087 = vmatpush3.bf16.msra.mxu1 %v1178_v17  ;;  %254 = vmatpush1.bf16.msra.mxu0 %v1179_v18 }
  0x3b   :  { %1088 = vmatprep.subr.bf16.mxu1 %v1358_v0  ;;  %255 = vmatprep.subr.bf16.mxu0 %v1180_v19 }
  0x3e   :  { %1089 = vmatpush3.bf16.msra.mxu1 %v1182_v20  ;;  %256 = vmatpush1.bf16.msra.mxu0 %v1183_v21 }
  0x3f   :  { %1090 = vmatprep.subr.bf16.mxu1 %v1358_v0  ;;  %257 = vmatprep.subr.bf16.mxu0 %v1184_v22 }
  0x42   :  { %1091 = vmatpush3.bf16.msra.mxu1 %v1186_v23  ;;  %258 = vmatpush1.bf16.msra.mxu0 %v1187_v24 }
  0x43   :  { %1092 = vmatprep.subr.bf16.mxu1 %v1358_v0  ;;  %259 = vmatprep.subr.bf16.mxu0 %v1188_v25 }
  0x46   :  { %1093 = vmatpush3.bf16.msra.mxu1 %v1190_v26  ;;  %260 = vmatpush1.bf16.msra.mxu0 %v1191_v27 }
  0x47   :  { %392 = vmatprep.subr.bf16.mxu0 %v1194_v29  ;;  %1128 = vmatprep.subr.bf16.mxu1 %v1194_v29 }
  0x49   :  { %1095 = vmatmul.mubr.bf16.vlgmr.msra.gmra.mrb[0].mxu1 %v67_v30  ;;  %278 = vmatmul.mubr.bf16.vlgmr.msra.gmra.mrb[0].mxu0 %v67_v30 }
  0x4a   :  { %393 = vmatpush1.bf16.msra.mxu0 %v1192_v31  ;;  %1129 = vmatpush1.bf16.msra.mxu1 %v1192_v31 }
  0x4b   :  { %454 = vmatprep.mubr.bf16.mxu1 %v1360_v1  ;;  %424 = vmatprep.mubr.bf16.mxu0 %v1360_v1 }
  0x4c   :  { %1098 = vmatprep.subr.bf16.mxu1 %v1197_v32 }
  0x51   :  { %981 = vmatmul.mubr.msk.bf16.vlgmr.msra.gmra.mrb[4].mxu1 %vm379_vm1, %v1195_v33  ;;  %978 = vmatmul.mubr.msk.bf16.vlgmr.msra.gmra.mrb[4].mxu0 %vm379_vm1, %v1196_v34 }
  0x52   :  { %1099 = vmatpush3.bf16.msra.mxu1 %v1197_v32  ;;  %1100 = vmatprep.mubr.msk.bf16.mxu1 %vm379_vm1, %v1196_v34 }
  0x53   :  { %434 = vmatprep.mubr.bf16.mxu0 %v1360_v1 }
  0x59   :  { %1101 = vmatmul.mubr.msk.bf16.vlgmr.msra.gmra.mrb[8].mxu1 %vm379_vm1, %v1198_v35  ;;  %979 = vmatmul.mubr.msk.bf16.gmra.mrb[8].mxu0 %vm379_vm1, %v1198_v35 }
  0x5a   :  { %1104 = vmatprep.mubr.msk.bf16.mxu1 %vm379_vm1, %v1199_v36  ;;  %444 = vmatprep.mubr.bf16.mxu0 %v1360_v1 }
  0x61   :  { %1105 = vmatmul.mubr.msk.bf16.gmra.mrb[12].mxu1 %vm379_vm1, %v1195_v33  ;;  %980 = vmatmul.mubr.msk.bf16.gmra.mrb[12].mxu0 %vm379_vm1, %v1199_v36 }
 0x11c   :  { %v320_v46 = vpop.f32.mrb[0].mxu1  ;;  %v279_v47 = vpop.f32.mrb[0].mxu0 }
 0x11d   :  { %v1484_v48 = vadd.f32 %v320_v46, %v113_v43  ;;  %v1486_v49 = vadd.f32 %v279_v47, %v105_v44  ;;  %v1096_v50 = vpop.f32.mrb[1].mxu1  ;;  %v281_v51 = vpop.f32.mrb[1].mxu0 }
 0x11e   :  { %v1488_v52 = vadd.f32 %v281_v51, %v109_v45  ;;  %v323_v53 = vpop.f32.mrb[2].mxu1  ;;  %v283_v54 = vpop.f32.mrb[2].mxu0 }
 0x11f   :  { %v1097_v55 = vpop.f32.mrb[3].mxu1  ;;  %v284_v56 = vpop.f32.mrb[3].mxu0 }
 0x124   :  { %v456_v57 = vpop.f32.mrb[4].mxu1  ;;  %v426_v58 = vpop.f32.mrb[4].mxu0 }
 0x125   :  { %548 = vst [vmem:[#allocation2 + $0x90] sm:$0xff] %v456_v57  ;;  %530 = vst [vmem:[#allocation2] sm:$0xff] %v426_v58  ;;  %v458_v59 = vpop.f32.mrb[5].mxu1  ;;  %v428_v60 = vpop.f32.mrb[5].mxu0 }
 0x126   :  { %549 = vst [vmem:[#allocation2 + $0x98] sm:$0xff] %v458_v59  ;;  %531 = vst [vmem:[#allocation2 + $0x8] sm:$0xff] %v428_v60  ;;  %v460_v61 = vpop.f32.mrb[6].mxu1  ;;  %v430_v62 = vpop.f32.mrb[6].mxu0 }
 0x127   :  { %551 = vst [vmem:[#allocation2 + $0xa8] sm:$0xff] %v460_v61  ;;  %533 = vst [vmem:[#allocation2 + $0x18] sm:$0xff] %v430_v62  ;;  %v462_v63 = vpop.f32.mrb[7].mxu1  ;;  %v432_v0 = vpop.f32.mrb[7].mxu0 }
 0x128   :  { %552 = vst [vmem:[#allocation2 + $0xb0] sm:$0xff] %v462_v63  ;;  %534 = vst [vmem:[#allocation2 + $0x20] sm:$0xff] %v432_v0 }
 0x12c   :  { %v1102_v1 = vpop.f32.mrb[8].mxu1  ;;  %v436_v4 = vpop.f32.mrb[8].mxu0 }
 0x12d   :  { %538 = vst [vmem:[#allocation2 + $0x40] sm:$0xff] %v1102_v1  ;;  %536 = vst [vmem:[#allocation2 + $0x30] sm:$0xff] %v436_v4  ;;  %v499_v5 = vpop.f32.mrb[9].mxu1  ;;  %v438_v6 = vpop.f32.mrb[9].mxu0 }
 0x12e   :  { %532 = vst [vmem:[#allocation2 + $0x10] sm:$0xff] %v499_v5  ;;  %537 = vst [vmem:[#allocation2 + $0x38] sm:$0xff] %v438_v6  ;;  %v1103_v7 = vpop.f32.mrb[10].mxu1  ;;  %v440_v8 = vpop.f32.mrb[10].mxu0 }
 0x12f   :  { %541 = vst [vmem:[#allocation2 + $0x58] sm:$0xff] %v1103_v7  ;;  %539 = vst [vmem:[#allocation2 + $0x48] sm:$0xff] %v440_v8  ;;  %v502_v9 = vpop.f32.mrb[11].mxu1  ;;  %v442_v10 = vpop.f32.mrb[11].mxu0 }
 0x130   :  { %535 = vst [vmem:[#allocation2 + $0x28] sm:$0xff] %v502_v9  ;;  %540 = vst [vmem:[#allocation2 + $0x50] sm:$0xff] %v442_v10 }
 0x134   :  { %v1106_v11 = vpop.f32.mrb[12].mxu1  ;;  %v446_v12 = vpop.f32.mrb[12].mxu0 }
 0x135   :  { %550 = vst [vmem:[#allocation2 + $0xa0] sm:$0xff] %v1106_v11  ;;  %542 = vst [vmem:[#allocation2 + $0x60] sm:$0xff] %v446_v12  ;;  %v515_v13 = vpop.f32.mrb[13].mxu1  ;;  %v448_v14 = vpop.f32.mrb[13].mxu0 }
 0x136   :  { %544 = vst [vmem:[#allocation2 + $0x70] sm:$0xff] %v515_v13  ;;  %543 = vst [vmem:[#allocation2 + $0x68] sm:$0xff] %v448_v14  ;;  %v1107_v15 = vpop.f32.mrb[14].mxu1  ;;  %v450_v16 = vpop.f32.mrb[14].mxu0 }
 0x137   :  { %553 = vst [vmem:[#allocation2 + $0xb8] sm:$0xff] %v1107_v15  ;;  %545 = vst [vmem:[#allocation2 + $0x78] sm:$0xff] %v450_v16  ;;  %v518_v17 = vpop.f32.mrb[15].mxu1  ;;  %v452_v18 = vpop.f32.mrb[15].mxu0 }
 0x138   :  { %547 = vst [vmem:[#allocation2 + $0x88] sm:$0xff] %v518_v17  ;;  %546 = vst [vmem:[#allocation2 + $0x80] sm:$0xff] %v452_v18 }
 0x139 LB: > { %v1200_v19 = vld [vmem:[#allocation9 + $0x4] ss:$12 sps:$4 sm:$0xff]   ;;  %v1202_v20 = vld [vmem:[#allocation9] ss:$12 sps:$4 sm:$0xff]   ;;  %v1361_v21 = vmov 0.0   ;;  %v1362_v22 = vmov 0   ;;  %v584_v43 = vpack.c.bf16 %v1348_v2, %v1348_v2  ;;  %s1352_s0 = sphi %s1493_s0, %s570_s0   ;;  %v1348_v2 = vphi %v1446_v2, %v1559_v2  }
 0x13a   : > { %1108 = vmatprep.subr.bf16.mxu1 %v1361_v21  ;;  %777 = vmatprep.mubr.bf16.mxu0 %v1362_v22  ;;  %v1203_v23 = vld [vmem:[#allocation9 + $0x1c] ss:$12 sps:$4 sm:$0xff]   ;;  %vm1363_vm2 = vmmov 0   ;;  %v1205_v24 = vld [vmem:[#allocation9 + $0x18] ss:$12 sps:$4 sm:$0xff]   ;;  %s987_s6 = sshll.u32 %s1352_s0, 3 }
 0x13b   : > { %745 = vmatprep.subr.bf16.mxu0 %v1200_v19  ;;  %1124 = vmatprep.mubr.msk.bf16.mxu1 %vm1363_vm2, %v1361_v21  ;;  %v1206_v25 = vld [vmem:[#allocation9 + $0x34] ss:$12 sps:$4 sm:$0xff]   ;;  %v1208_v26 = vld [vmem:[#allocation9 + $0x30] ss:$12 sps:$4 sm:$0xff]   ;;  %v1209_v27 = vld [vmem:[#allocation9 + $0x4c] ss:$12 sps:$4 sm:$0xff]  }
 0x13c   : > { %746 = vmatpush1.bf16.msra.mxu0 %v1202_v20  ;;  %v1220_v28 = vld [vmem:[#allocation9 + $0x8] ss:$12 sps:$4 sm:$0xff]   ;;  %v1212_v30 = vld [vmem:[#allocation9 + $0x64] ss:$12 sps:$4 sm:$0xff]   ;;  %v1224_v31 = vld [vmem:[#allocation9 + $0x20] ss:$12 sps:$4 sm:$0xff]  }
 0x13d   : > { %747 = vmatprep.subr.bf16.mxu0 %v1203_v23  ;;  %v1211_v29 = vld [vmem:[#allocation9 + $0x48] ss:$12 sps:$4 sm:$0xff]   ;;  %1109 = vmatpush3.bf16.msra.mxu1 %v1220_v28  ;;  %v1214_v32 = vld [vmem:[#allocation9 + $0x60] ss:$12 sps:$4 sm:$0xff]   ;;  %v1226_v33 = vld [vmem:[#allocation9 + $0x38] ss:$12 sps:$4 sm:$0xff]  }
 0x13e   : > { %1110 = vmatprep.subr.bf16.mxu1 %v1361_v21  ;;  %v1215_v34 = vld [vmem:[#allocation9 + $0x7c] ss:$12 sps:$4 sm:$0xff]   ;;  %v1217_v35 = vld [vmem:[#allocation9 + $0x78] ss:$12 sps:$4 sm:$0xff]   ;;  %v1218_v37 = vld [vmem:[#allocation9 + $0x94] ss:$12 sps:$4 sm:$0xff]  }
 0x13f   : > { %v1227_v36 = vld [vmem:[#allocation9 + $0x50] ss:$12 sps:$4 sm:$0xff]   ;;  %v1228_v39 = vld [vmem:[#allocation9 + $0x68] ss:$12 sps:$4 sm:$0xff]   ;;  %v1222_v40 = vld [vmem:[#allocation9 + $0xac] ss:$12 sps:$4 sm:$0xff]  }
 0x140   : > { %748 = vmatpush1.bf16.msra.mxu0 %v1205_v24  ;;  %v1221_v38 = vld [vmem:[#allocation9 + $0x90] ss:$12 sps:$4 sm:$0xff]   ;;  %v1225_v41 = vld [vmem:[#allocation9 + $0xa8] ss:$12 sps:$4 sm:$0xff]   ;;  %v1229_v42 = vld [vmem:[#allocation9 + $0x80] ss:$12 sps:$4 sm:$0xff]  }
 0x141   : > { %749 = vmatprep.subr.bf16.mxu0 %v1206_v25  ;;  %1111 = vmatpush3.bf16.msra.mxu1 %v1224_v31  ;;  %v1230_v44 = vld [vmem:[#allocation9 + $0x98] ss:$12 sps:$4 sm:$0xff]   ;;  %v1231_v45 = vld [vmem:[#allocation9 + $0xb0] ss:$12 sps:$4 sm:$0xff]   ;;  %s573_s30 = sshra.s32 %s987_s6, 3  ;;  %s848_s4 = scalar_lea.vmem [#allocation5], %s987_s6 }
 0x142   : > { %1112 = vmatprep.subr.bf16.mxu1 %v1361_v21  ;;  %s1023_s11 = smul.u32 24, %s573_s30  ;;  %s570_s0 = sadd.s32 1, %s1352_s0  }
 0x143   : > { %p567_p2 = scmp.ge.s32.totalorder %s570_s0, 8  }
 0x144   : > { %750 = vmatpush1.bf16.msra.mxu0 %v1208_v26  ;;  %s577_s12 = scalar_lea.vmem [#allocation2], %s1023_s11  ;;  %s1364_s10 = smov (%p567_p2), [#allocation11]  }
 0x145   : > { %751 = vmatprep.subr.bf16.mxu0 %v1209_v27  ;;  %1113 = vmatpush3.bf16.msra.mxu1 %v1226_v33  ;;  %v578_v46 = vld [vmem:[%s577_s12] sm:$0xff]  ;;  %v579_v50 = vld [vmem:[%s577_s12 + $0x8] sm:$0xff]  ;;  %v580_v6 = vld [vmem:[%s577_s12 + $0x10] sm:$0xff]  ;;  %s908_s13 = sshll.u32 (%p567_p2), %s1364_s10, 4  ;;  %s1365_s14 = smov (%p567_p2), [#allocation12]   ;;  %s1518_s13 = int_to_ptr.vmem [resolvable:$true] %s908_s13 }
 0x146   : > { %1114 = vmatprep.subr.bf16.mxu1 %v1361_v21  ;;  %v581_v47 = vadd.f32 %v578_v46, %v1486_v49  ;;  %v582_v53 = vadd.f32 %v579_v50, %v1488_v52  ;;  %v583_v9 = vadd.f32 %v580_v6, %v1484_v48  ;;  %s921_s15 = sshll.u32 (%p567_p2), %s1365_s14, 4  ;;  %s922_s15 = int_to_ptr.vmem [resolvable:$true] %s921_s15 }
 0x147   :  { %s1286_s16 = scalar_lea.vmem (%p567_p2), %s922_s15, 128  ;;  %p1291_p4 = scmp.lt.s32.totalorder (%p567_p2), %s922_s15, %s922_s15 }
 0x148   : > { %752 = vmatpush1.bf16.msra.mxu0 %v1211_v29  ;;  %p1287_p3 = scmp.ne.s32.totalorder (%p567_p2), %s922_s15, %s1286_s16  ;;  %p1292_p5 = scmp.lt.s32.totalorder (%p567_p2), %s1286_s16, %s1286_s16 }
 0x149   : > { %753 = vmatprep.subr.bf16.mxu0 %v1212_v30  ;;  %1115 = vmatpush3.bf16.msra.mxu1 %v1227_v36 }
 0x14a   : > { %1116 = vmatprep.subr.bf16.mxu1 %v1361_v21  ;;  %p1293_p6 = por (%p567_p2), %p1292_p5, %p1291_p4 }
 0x14c   : > { %754 = vmatpush1.bf16.msra.mxu0 %v1214_v32  ;;  %p1294_p7 = pnand (%p567_p2), %p1293_p6, %p1287_p3 }
 0x14d   : > { %755 = vmatprep.subr.bf16.mxu0 %v1215_v34  ;;  %1117 = vmatpush3.bf16.msra.mxu1 %v1228_v39 }
 0x14e   : > { %1118 = vmatprep.subr.bf16.mxu1 %v1361_v21 }
 0x150   : > { %756 = vmatpush1.bf16.msra.mxu0 %v1217_v35 }
 0x151   : > { %757 = vmatprep.subr.bf16.mxu0 %v1218_v37  ;;  %1119 = vmatpush3.bf16.msra.mxu1 %v1229_v42 }
 0x152   : > { %1120 = vmatprep.subr.bf16.mxu1 %v1361_v21 }
 0x154   : > { %758 = vmatpush1.bf16.msra.mxu0 %v1221_v38 }
 0x155   : > { %759 = vmatprep.subr.bf16.mxu0 %v1222_v40  ;;  %1121 = vmatpush3.bf16.msra.mxu1 %v1230_v44 }
 0x156   : > { %1122 = vmatprep.subr.bf16.mxu1 %v1361_v21 }
 0x158   : > { %760 = vmatpush1.bf16.msra.mxu0 %v1225_v41 }
 0x159   : > { %1123 = vmatpush3.bf16.msra.mxu1 %v1231_v45 }
 0x15b   : > { %778 = vmatmul.mubr.bf16.vlgmr.msra.gmra.mrb[0].mxu0 %v584_v43 }
 0x15c   : > { %1125 = vmatmul.mubr.bf16.vlgmr.msra.gmra.mrb[0].mxu1 %v584_v43 }
 0x22e   : > { %v779_v51 = vpop.f32.mrb[0].mxu0 }
 0x22f   : > { %v826_v54 = vadd.f32 %v779_v51, %v581_v47  ;;  %v781_v55 = vpop.f32.mrb[1].mxu0  ;;  %v820_v61 = vpop.f32.mrb[0].mxu1 }
 0x230   : > { %v783_v56 = vpop.f32.mrb[2].mxu0  ;;  %v833_v59 = vadd.f32 %v781_v55, %v582_v53  ;;  %v1126_v62 = vpop.f32.mrb[1].mxu1  ;;  %v840_v8 = vadd.f32 %v1451_v3, %v820_v61 }
 0x231   : > { %v1013_v57 = vmul.f32 -1.442695, %v826_v54  ;;  %v784_v58 = vpop.f32.mrb[3].mxu0  ;;  %v823_v63 = vpop.f32.mrb[2].mxu1 }
 0x232   : > { %v1014_v60 = vmul.f32 -1.442695, %v833_v59  ;;  %v1127_v0 = vpop.f32.mrb[3].mxu1 }
 0x233   : > { %1232 = vpow2.f32 %v1013_v57 }
 0x234   : > { %1234 = vpow2.f32 %v1014_v60 }
 0x23d   : > { %v1233_v1 = vpop.eup %1232 }
 0x23e   : > { %v830_v4 = vadd.f32 1.0, %v1233_v1  ;;  %v1235_v5 = vpop.eup %1234 }
 0x23f   : > { %v837_v7 = vadd.f32 1.0, %v1235_v5 }
 0x240   : > { %1236 = vrcp.f32 %v830_v4 }
 0x241   : > { %1238 = vrcp.f32 %v837_v7 }
 0x24a   : > { %v1237_v10 = vpop.eup %1236 }
 0x24b   : > { %v841_v11 = vmul.f32 %v1237_v10, %v840_v8  ;;  %v1239_v13 = vpop.eup %1238 }
 0x24c   : > { %v844_v14 = vsub.f32 1.0, %v1239_v13  ;;  %v846_v16 = vmul.f32 %v1348_v2, %v1239_v13 }
 0x24d   : > { %v842_v12 = vadd.f32 %v841_v11, %v583_v9 }
 0x24f   : > { %1240 = vtanh.f32 %v842_v12 }
 0x258   :  { %569 = sbr.rel (!%p567_p2) target bundleno = 313 (0x139), region = 85 }
 0x259   : > { %v1241_v15 = vpop.eup %1240 }
 0x25a   : > { %v845_v17 = vmul.f32 %v1241_v15, %v844_v14 }
 0x25c   : > { %v847_v18 = vadd.f32 %v846_v16, %v845_v17  }
 0x25e   : > { %849 = vst [vmem:[%s848_s4] sm:$0xff] %v847_v18  ;;  %v1559_v2 = vmov %v847_v18  ;;  %902 = vst [vmem:[#allocation12] sm:$0xff] (%p567_p2), %v847_v18 }
 0x265   :  { %v851_v19 = vld [vmem:[#allocation5] sm:$0xff]  ;;  %v852_v20 = vld [vmem:[#allocation5 + $0x8] sm:$0xff]  ;;  %v853_v21 = vld [vmem:[#allocation5 + $0x10] sm:$0xff] }
 0x266   :  { %v1035_v22 = vpack.c.bf16 %v852_v20, %v851_v19  ;;  %v854_v23 = vld [vmem:[#allocation5 + $0x18] sm:$0xff]  ;;  %v855_v2 = vld [vmem:[#allocation5 + $0x20] sm:$0xff]  ;;  %v856_v24 = vld [vmem:[#allocation5 + $0x28] sm:$0xff] }
 0x267   :  { %v1040_v25 = vpack.c.bf16 %v854_v23, %v853_v21  ;;  %v1045_v26 = vpack.c.bf16 %v856_v24, %v855_v2  ;;  %v857_v27 = vld [vmem:[#allocation5 + $0x30] sm:$0xff]  ;;  %v858_v28 = vld [vmem:[#allocation5 + $0x38] sm:$0xff] }
 0x268   :  { %1036 = vst [vmem:[#allocation11] sm:$0xff] %v1035_v22   ;;  %v1050_v29 = vpack.c.bf16 %v858_v28, %v857_v27 }
 0x269   :  { %1052 = vst [vmem:[#allocation11 + $0x8] sm:$0xff] %v1040_v25   ;;  %1053 = vst [vmem:[#allocation11 + $0x10] sm:$0xff] %v1045_v26  }
 0x26a   :  { %1054 = vst [vmem:[#allocation11 + $0x18] sm:$0xff] %v1050_v29  }
 0x26b   :  { %1297 = shalt.err (!%p1294_p7)
}
 0x26c   :  { %s1298_s7 = scalar_lea.hbm %s1558_s9, 128 }
 0x26d   :  { %p1299_p8 = scmp.ne.s32.totalorder %s1558_s9, %s1298_s7  ;;  %p1302_p9 = scmp.lt.u32.totalorder %s1298_s7, %s1558_s9 }
 0x26f   :  { %p1304_p10 = pnand %p1302_p9, %p1299_p8 }
 0x271   :  { %1307 = shalt.err (!%p1304_p10)
}
 0x272   :  { %924 = dma.vmem_to_hbm [thread:$0]  %s922_s15, 128, %s1558_s9, [#allocation13]  }
 0x273   :  { %s1308_s22 = scalar_lea.vmem %s1518_s13, 512  ;;  %p1313_p12 = scmp.lt.s32.totalorder %s1518_s13, %s1518_s13 }
 0x274   :  { %p1309_p11 = scmp.ne.s32.totalorder %s1518_s13, %s1308_s22  ;;  %p1314_p13 = scmp.lt.s32.totalorder %s1308_s22, %s1308_s22 }
 0x276   :  { %p1315_p0 = por %p1314_p13, %p1313_p12 }
 0x278   :  { %p1316_p1 = pnand %p1315_p0, %p1309_p11 }
 0x27a   :  { %1319 = shalt.err (!%p1316_p1)
}
 0x27b   :  { %s1320_s3 = scalar_lea.hbm %s1557_s8, 512 }
 0x27c   :  { %p1321_p2 = scmp.ne.s32.totalorder %s1557_s8, %s1320_s3  ;;  %p1324_p3 = scmp.lt.u32.totalorder %s1320_s3, %s1557_s8 }
 0x27e   :  { %p1326_p4 = pnand %p1324_p3, %p1321_p2 }
 0x280   :  { %1329 = shalt.err (!%p1326_p4)
}
 0x281   :  { %s1366_s9 = smov 64   ;;  %s1367_s29 = smov 4  }
 0x282   :  { %914 = dma.vmem_to_hbm [thread:$0]  %s1518_s13, 512, %s1557_s8, [#allocation8], %s1366_s9, %s1366_s9, %s1367_s29  }
 0x283   :  { %1342 = dma.done.wait [#allocation8], 512  }
 0x284   :  { %1343 = vsyncadd [#allocation8], 4294966784 }
 0x285   :  { %1344 = dma.done.wait [#allocation13], 128  }
 0x286   :  { %1345 = vsyncadd [#allocation13], 4294967168 }
 0x287   :  { %931 = vsyncpa [#allocation7], 1 }
 0x288   :  { %932 = vsyncpa [#allocation10], 1 }
 0x289   :  { %933 = vsyncpa [#allocation8], 1 }
 0x28a   :  { %934 = vsyncpa [#allocation13], 1 }

</bundles_post_ra>
